<compile_context>
chip_gen: v6e
topology: v6e:2x2x1
jax: 0.10.0
libtpu: 0.0.40
codegen_flags: <defaults>
</compile_context>

<pallas_src>
import math

import jax
import jax.numpy as jnp
from jax.experimental import pallas as pl
from jax.experimental.pallas import tpu as pltpu


# ----------------------------- config ---------------------------------------
D_MODEL = 32
D_KV = 8
N_HEADS = 4
INNER = N_HEADS * D_KV          # 32
NUM_BUCKETS = 32
MAX_DISTANCE = 128
IS_DECODER = False              # encoder self-attention -> bidirectional buckets
DROPOUT = 0.0                   # dropout_rate = 0 -> identity (eval semantics)
NEG_INF = jnp.float32(-1e30)    # cross-batch logit mask (exp underflows to 0)


# ------------------- relative position bias (plain JAX glue) ----------------
def _relative_position_bucket(relative_position, bidirectional, num_buckets,
                              max_distance):
    relative_buckets = jnp.zeros_like(relative_position)
    if bidirectional:
        num_buckets //= 2
        relative_buckets += (relative_position > 0).astype(jnp.int32) * num_buckets
        relative_position = jnp.abs(relative_position)
    else:
        relative_position = -jnp.minimum(relative_position,
                                         jnp.zeros_like(relative_position))
    max_exact = num_buckets // 2
    is_small = relative_position < max_exact
    # Clamp to >= 1 before the log so the unselected branch stays finite
    # (review fix: log(0) -> -inf -> implementation-defined int cast).
    safe_rel = jnp.maximum(relative_position, 1).astype(jnp.float32)
    rel_if_large = max_exact + (
        jnp.log(safe_rel / max_exact)
        / math.log(max_distance / max_exact)
        * (num_buckets - max_exact)
    ).astype(jnp.int32)
    rel_if_large = jnp.minimum(rel_if_large, num_buckets - 1)
    relative_buckets += jnp.where(is_small, relative_position, rel_if_large)
    return relative_buckets


def compute_bias(rel_attn_bias_table, query_length, key_length):
    """Returns position bias of shape [1, n_heads, q_len, k_len]."""
    context_position = jnp.arange(query_length, dtype=jnp.int32)[:, None]
    memory_position = jnp.arange(key_length, dtype=jnp.int32)[None, :]
    relative_position = memory_position - context_position
    buckets = _relative_position_bucket(
        relative_position,
        bidirectional=not IS_DECODER,
        num_buckets=NUM_BUCKETS,
        max_distance=MAX_DISTANCE,
    )
    values = rel_attn_bias_table[buckets]            # [q, k, n_heads]
    values = jnp.transpose(values, (2, 0, 1))[None]  # [1, n_heads, q, k]
    return values


# ----------------------------- Pallas kernel --------------------------------
def t5_attention_kernel(hs_ref, wqkv_ref, wo_ref, biasmask_ref, out_ref):
    hs = hs_ref[...]              # (B*S, D_MODEL)
    wqkv = wqkv_ref[...]          # (3*H, D_MODEL, D_KV)   q-heads, k-heads, v-heads
    wo_h = wo_ref[...]            # (H, D_KV, D_MODEL)
    biasmask = biasmask_ref[...]  # (H, B*S, B*S)  rel-pos bias + cross-batch -1e30

    bs = hs.shape[0]              # B*S (static)
    g = wqkv.shape[0]             # 3*N_HEADS (static)

    # Hoisted once: replicate activations along the head-group (major) dim so
    # the projection is ONE batched matmul in standard MXU orientation.
    hs_rep = jnp.broadcast_to(hs, (g, bs, D_MODEL))                 # (3H, B*S, D)

    # One batched q/k/v projection (T5: no bias, no 1/sqrt(d_kv) scaling).
    qkv = jnp.einsum('gid,gde->gie', hs_rep, wqkv,
                     preferred_element_type=jnp.float32)            # (3H, B*S, Dk)

    # Leading-(major)-dim slices: free, no cross-lane extraction.
    q = qkv[0:N_HEADS]                                              # (H, B*S, Dk)
    k = qkv[N_HEADS:2 * N_HEADS]
    v = qkv[2 * N_HEADS:3 * N_HEADS]

    # Scores for all (batch, head) pairs in one batched dot (contract last-last:
    # q @ k^T with no materialized transpose).  Cross-batch entries are killed
    # by the -1e30 folded into `biasmask`.
    scores = jnp.einsum('hid,hjd->hij', q, k,
                        preferred_element_type=jnp.float32)         # (H, B*S, B*S)
    scores = scores + biasmask

    # ONE vectorized softmax over the whole block; reciprocal-multiply instead
    # of a divide (kept exact for tight f32 agreement with the reference).
    m = jnp.max(scores, axis=-1, keepdims=True)
    e = jnp.exp(scores - m)
    denom = jnp.sum(e, axis=-1, keepdims=True)
    w = e * pl.reciprocal(denom, approx=False)

    # Batched context and output projection; masked-out weights are exactly 0
    # so summing over all B*S keys is correct per batch element.
    ctx = jnp.einsum('hij,hjd->hid', w, v,
                     preferred_element_type=jnp.float32)            # (H, B*S, Dk)
    out_h = jnp.einsum('hid,hdm->him', ctx, wo_h,
                       preferred_element_type=jnp.float32)          # (H, B*S, D)

    # Head reduction along the major axis (cheap VPU adds; no lane concat).
    out_ref[...] = jnp.sum(out_h, axis=0)                           # (B*S, D)


def _split_heads_cols(w):
    """(D_MODEL, INNER) -> (H, D_MODEL, D_KV), head h gets columns h*Dk:(h+1)*Dk."""
    return jnp.transpose(w.reshape(D_MODEL, N_HEADS, D_KV), (1, 0, 2))


def t5_attention(hidden_states, wq, wk, wv, wo, rel_attn_bias_table, mask=None):
    """Returns (attn_output [B,S,D], position_bias [*,H,S,S]) like T5Attention."""
    B, S, D = hidden_states.shape
    assert D == D_MODEL

    position_bias = compute_bias(rel_attn_bias_table, S, S)       # (1, H, S, S)
    if mask is not None:
        # Same semantics as the PyTorch module: mask is additive and is folded
        # into (and returned with) the position bias.
        position_bias = position_bias + mask                      # (B', H, S, S)

    # Fold a block-diagonal "same batch" validity mask into the bias so the
    # kernel can run one softmax / one context matmul over all B*S keys.
    pb = jnp.broadcast_to(position_bias,
                          (B, N_HEADS, S, S)).astype(jnp.float32)  # (B, H, S, S)
    pb_t = jnp.transpose(pb, (1, 0, 2, 3))[:, :, :, None, :]       # (H, B, S, 1, S)
    same_batch = jnp.eye(B, dtype=bool)[None, :, None, :, None]    # (1, B, 1, B, 1)
    biasmask = jnp.where(same_batch, pb_t, NEG_INF)                # (H, B, S, B, S)
    biasmask = biasmask.reshape(N_HEADS, B * S, B * S)

    # Wrapper-side layout plumbing: flatten batch*seq; stack per-head q/k/v
    # weights on a leading (major) dim so the kernel never lane-slices.
    hs2d = hidden_states.reshape(B * S, D_MODEL)
    wqkv3 = jnp.concatenate([_split_heads_cols(wq),
                             _split_heads_cols(wk),
                             _split_heads_cols(wv)], axis=0)       # (3H, D, Dk)
    wo_h = wo.reshape(N_HEADS, D_KV, D_MODEL)                      # (H, Dk, D)

    # Single kernel invocation: everything VMEM-resident (working set << 1 MiB
    # on v5e/v6e/v7x).  For larger B/S, reintroduce a "parallel" grid axis over
    # batch*heads and per-tile bias BlockSpecs.
    out2d = pl.pallas_call(
        t5_attention_kernel,
        out_shape=jax.ShapeDtypeStruct((B * S, D_MODEL), jnp.float32),
        in_specs=[
            pl.BlockSpec(memory_space=pltpu.MemorySpace.VMEM),
            pl.BlockSpec(memory_space=pltpu.MemorySpace.VMEM),
            pl.BlockSpec(memory_space=pltpu.MemorySpace.VMEM),
            pl.BlockSpec(memory_space=pltpu.MemorySpace.VMEM),
        ],
        out_specs=pl.BlockSpec(memory_space=pltpu.MemorySpace.VMEM),
    )(hs2d, wqkv3, wo_h, biasmask)

    return out2d.reshape(B, S, D_MODEL), position_bias


# ----------------------------- reference (pure JAX) --------------------------
def t5_attention_ref(hidden_states, wq, wk, wv, wo, rel_attn_bias_table,
                     mask=None):
    B, S, _ = hidden_states.shape
    q = hidden_states @ wq
    k = hidden_states @ wk
    v = hidden_states @ wv

    def shape(x):
        return jnp.transpose(x.reshape(B, S, N_HEADS, D_KV), (0, 2, 1, 3))

    qh, kh, vh = shape(q), shape(k), shape(v)                    # [B,H,S,Dk]
    scores = jnp.einsum("bhqd,bhkd->bhqk", qh, kh)
    bias = compute_bias(rel_attn_bias_table, S, S)
    if mask is not None:
        bias = bias + mask
    scores = scores + bias
    weights = jax.nn.softmax(scores.astype(jnp.float32), axis=-1)
    ctx = jnp.einsum("bhqk,bhkd->bhqd", weights, vh)
    ctx = jnp.transpose(ctx, (0, 2, 1, 3)).reshape(B, S, INNER)
    return ctx @ wo, bias


# ----------------------------------- main ------------------------------------
if __name__ == "__main__":
    B, S = 2, 8
    key = jax.random.PRNGKey(0)
    k0, k1, k2, k3, k4, k5 = jax.random.split(key, 6)

    hidden_states = jax.random.normal(k0, (B, S, D_MODEL), dtype=jnp.float32)
    wq = 0.1 * jax.random.normal(k1, (D_MODEL, INNER), dtype=jnp.float32)
    wk = 0.1 * jax.random.normal(k2, (D_MODEL, INNER), dtype=jnp.float32)
    wv = 0.1 * jax.random.normal(k3, (D_MODEL, INNER), dtype=jnp.float32)
    wo = 0.1 * jax.random.normal(k4, (INNER, D_MODEL), dtype=jnp.float32)
    rel_attn_bias_table = 0.1 * jax.random.normal(
        k5, (NUM_BUCKETS, N_HEADS), dtype=jnp.float32)

    # ---- mask=None path (matches the previous test) ----
    out, pos_bias = t5_attention(hidden_states, wq, wk, wv, wo,
                                 rel_attn_bias_table)
    out = jax.block_until_ready(out)

    ref_out, ref_bias = t5_attention_ref(hidden_states, wq, wk, wv, wo,
                                         rel_attn_bias_table)
    assert out.shape == (B, S, D_MODEL)
    assert pos_bias.shape == (1, N_HEADS, S, S)
    assert jnp.allclose(out, ref_out, atol=1e-4, rtol=1e-4)
    assert jnp.allclose(pos_bias, ref_bias, atol=1e-6, rtol=1e-6)

    # ---- additive attention mask path (review correctness concern) ----
    # HF-style extended mask: 0 for keep, -1e9 for masked key positions;
    # mask the last two key positions of batch element 1.
    key_keep = jnp.ones((B, S), dtype=jnp.float32).at[1, 6:].set(0.0)
    mask = (1.0 - key_keep)[:, None, None, :] * jnp.float32(-1e9)   # (B,1,1,S)

    out_m, pos_bias_m = t5_attention(hidden_states, wq, wk, wv, wo,
                                     rel_attn_bias_table, mask=mask)
    out_m = jax.block_until_ready(out_m)
    ref_out_m, ref_bias_m = t5_attention_ref(hidden_states, wq, wk, wv, wo,
                                             rel_attn_bias_table, mask=mask)
    assert out_m.shape == (B, S, D_MODEL)
    assert pos_bias_m.shape == (B, N_HEADS, S, S)
    assert jnp.allclose(out_m, ref_out_m, atol=1e-4, rtol=1e-4)
    assert jnp.allclose(pos_bias_m, ref_bias_m, atol=1e-6, rtol=1e-6)

    # TODO(synk): training-mode attention dropout (p>0) is not implemented;
    # dropout_rate=0 eval semantics only.
    print("KERNEL_OK")
</pallas_src>

<mosaic_0001>
module attributes {stable_mosaic.version = 11 : i64} {
  func.func @t5_attention_kernel(%arg0: memref<16x32xf32, #tpu.memory_space<vmem>>, %arg1: memref<12x32x8xf32, #tpu.memory_space<vmem>>, %arg2: memref<4x8x32xf32, #tpu.memory_space<vmem>>, %arg3: memref<4x16x16xf32, #tpu.memory_space<vmem>>, %arg4: memref<16x32xf32, #tpu.memory_space<vmem>>) attributes {dimension_semantics = [], scalar_prefetch = 0 : i64, scratch_operands = 0 : i64, tpu.core_type = #tpu.core_type<tc>} {
    %c0 = arith.constant 0 : index
    %c0_0 = arith.constant 0 : index
    %0 = vector.load %arg0[%c0, %c0_0] : memref<16x32xf32, #tpu.memory_space<vmem>>, vector<16x32xf32>
    %c0_1 = arith.constant 0 : index
    %c0_2 = arith.constant 0 : index
    %c0_3 = arith.constant 0 : index
    %1 = vector.load %arg1[%c0_1, %c0_2, %c0_3] : memref<12x32x8xf32, #tpu.memory_space<vmem>>, vector<12x32x8xf32>
    %c0_4 = arith.constant 0 : index
    %c0_5 = arith.constant 0 : index
    %c0_6 = arith.constant 0 : index
    %2 = vector.load %arg2[%c0_4, %c0_5, %c0_6] : memref<4x8x32xf32, #tpu.memory_space<vmem>>, vector<4x8x32xf32>
    %c0_7 = arith.constant 0 : index
    %c0_8 = arith.constant 0 : index
    %c0_9 = arith.constant 0 : index
    %3 = vector.load %arg3[%c0_7, %c0_8, %c0_9] : memref<4x16x16xf32, #tpu.memory_space<vmem>>, vector<4x16x16xf32>
    %4 = vector.shape_cast %0 : vector<16x32xf32> to vector<1x16x32xf32>
    %5 = vector.broadcast %4 : vector<1x16x32xf32> to vector<12x16x32xf32>
    "tpu.trace_start"() <{level = 10 : i32, message = "gid,gde->gie"}> : () -> ()
    %cst = arith.constant dense<0.000000e+00> : vector<12x16x8xf32>
    %6 = tpu.matmul %5, %1, %cst {dimension_numbers = #tpu.dot_dimension_numbers<[2], [1], [1], [2], [0, 0, 0, 1, 1, 2], [0], [0]>} : vector<12x16x32xf32>, vector<12x32x8xf32>, vector<12x16x8xf32> -> vector<12x16x8xf32>
    "tpu.trace_stop"() : () -> ()
    %7 = vector.extract_strided_slice %6 {offsets = [0, 0, 0], sizes = [4, 16, 8], strides = [1, 1, 1]} : vector<12x16x8xf32> to vector<4x16x8xf32>
    %8 = vector.extract_strided_slice %6 {offsets = [4, 0, 0], sizes = [4, 16, 8], strides = [1, 1, 1]} : vector<12x16x8xf32> to vector<4x16x8xf32>
    %9 = vector.extract_strided_slice %6 {offsets = [8, 0, 0], sizes = [4, 16, 8], strides = [1, 1, 1]} : vector<12x16x8xf32> to vector<4x16x8xf32>
    "tpu.trace_start"() <{level = 10 : i32, message = "hid,hjd->hij"}> : () -> ()
    %cst_10 = arith.constant dense<0.000000e+00> : vector<4x16x16xf32>
    %10 = tpu.matmul %7, %8, %cst_10 {dimension_numbers = #tpu.dot_dimension_numbers<[2], [2], [1], [1], [0, 0, 0, 1, 1, 1], [0], [0]>} : vector<4x16x8xf32>, vector<4x16x8xf32>, vector<4x16x16xf32> -> vector<4x16x16xf32>
    "tpu.trace_stop"() : () -> ()
    %11 = arith.addf %10, %3 : vector<4x16x16xf32>
    %cst_11 = arith.constant dense<0xFF800000> : vector<4x16xf32>
    %12 = vector.multi_reduction <maximumf>, %11, %cst_11 [2] : vector<4x16x16xf32> to vector<4x16xf32>
    %13 = vector.shape_cast %12 : vector<4x16xf32> to vector<4x16x1xf32>
    %14 = vector.broadcast %13 : vector<4x16x1xf32> to vector<4x16x16xf32>
    %15 = arith.subf %11, %14 : vector<4x16x16xf32>
    %16 = math.exp %15 : vector<4x16x16xf32>
    %cst_12 = arith.constant dense<0.000000e+00> : vector<4x16xf32>
    %17 = vector.multi_reduction <add>, %16, %cst_12 [2] : vector<4x16x16xf32> to vector<4x16xf32>
    %18 = vector.shape_cast %17 : vector<4x16xf32> to vector<4x16x1xf32>
    %19 = tpu.reciprocal %18 : vector<4x16x1xf32> -> vector<4x16x1xf32>
    %20 = vector.broadcast %19 : vector<4x16x1xf32> to vector<4x16x16xf32>
    %21 = arith.mulf %16, %20 : vector<4x16x16xf32>
    "tpu.trace_start"() <{level = 10 : i32, message = "hij,hjd->hid"}> : () -> ()
    %cst_13 = arith.constant dense<0.000000e+00> : vector<4x16x8xf32>
    %22 = tpu.matmul %21, %9, %cst_13 {dimension_numbers = #tpu.dot_dimension_numbers<[2], [1], [1], [2], [0, 0, 0, 1, 1, 2], [0], [0]>} : vector<4x16x16xf32>, vector<4x16x8xf32>, vector<4x16x8xf32> -> vector<4x16x8xf32>
    "tpu.trace_stop"() : () -> ()
    "tpu.trace_start"() <{level = 10 : i32, message = "hid,hdm->him"}> : () -> ()
    %cst_14 = arith.constant dense<0.000000e+00> : vector<4x16x32xf32>
    %23 = tpu.matmul %22, %2, %cst_14 {dimension_numbers = #tpu.dot_dimension_numbers<[2], [1], [1], [2], [0, 0, 0, 1, 1, 2], [0], [0]>} : vector<4x16x8xf32>, vector<4x8x32xf32>, vector<4x16x32xf32> -> vector<4x16x32xf32>
    "tpu.trace_stop"() : () -> ()
    %cst_15 = arith.constant dense<0.000000e+00> : vector<16x32xf32>
    %24 = vector.multi_reduction <add>, %23, %cst_15 [0] : vector<4x16x32xf32> to vector<16x32xf32>
    %c0_16 = arith.constant 0 : index
    %c0_17 = arith.constant 0 : index
    %25 = vector.load %arg4[%c0_16, %c0_17] : memref<16x32xf32, #tpu.memory_space<vmem>>, vector<16x32xf32>
    tpu.vector_store %arg4[%c0_16, %c0_17], %24 {strides = array<i32>} : memref<16x32xf32, #tpu.memory_space<vmem>>, vector<16x32xf32>,
    return
  }
}

</mosaic_0001>

<bundles_post_ra>
// kernel: tpu_custom_call.1
= control target key start
LH: loop header
LB: loop body
LE: loop exit
PB: predicated region body
PF: predicated region fallthrough
CT: control target
= control target key end

     0   :  { %vm80_vm0 = vcmask 261120   ;;  %s2893_s0 = inlined_call_operand.vmem [shape: f32[16,32], index: 0, kind: input, shape index: {}]   ;;  %s2894_s1 = inlined_call_operand.vmem [shape: f32[12,32,8], index: 1, kind: input, shape index: {}]   ;;  %s2895_s2 = inlined_call_operand.vmem [shape: f32[4,8,32], index: 2, kind: input, shape index: {}]   ;;  %s2896_s3 = inlined_call_operand.vmem [shape: f32[4,16,16], index: 3, kind: input, shape index: {}]   ;;  %s2897_s4 = inlined_call_operand.hbm [shape: f32[16,32], index: 4, kind: output, shape index: {}]  }
   0x1   :  { %v23_v0 = vld [vmem:[%s2894_s1 + $0x18] sm:$0xff]  ;;  %v22_v2 = vld [vmem:[%s2894_s1 + $0x10] sm:$0xff]  ;;  %v21_v4 = vld [vmem:[%s2894_s1 + $0x8] sm:$0xff] }
   0x2   :  { %v27_v1 = vld [vmem:[%s2894_s1 + $0x38] sm:$0xff]  ;;  %2277 = vmatprep.subr.mxu0 %v23_v0  ;;  %v26_v3 = vld [vmem:[%s2894_s1 + $0x30] sm:$0xff]  ;;  %v25_v5 = vld [vmem:[%s2894_s1 + $0x28] sm:$0xff] }
   0x3   :  { %2288 = vmatprep.subr.mxu1 %v27_v1  ;;  %2278 = vmatpush3.msra.mxu0 %v23_v0  ;;  %v20_v6 = vld [vmem:[%s2894_s1] sm:$0xff]  ;;  %v2602_v9 = vld [vmem:[%s2893_s0 + $0x8] sm:$0xff]  ;;  %v31_v10 = vld [vmem:[%s2894_s1 + $0x58] sm:$0xff] }
   0x4   :  { %2289 = vmatpush3.msra.mxu1 %v27_v1  ;;  %2279 = vmatprep.subr.mxu0 %v22_v2  ;;  %v24_v7 = vld [vmem:[%s2894_s1 + $0x20] sm:$0xff]  ;;  %v35_v11 = vld [vmem:[%s2894_s1 + $0x78] sm:$0xff]  ;;  %v30_v12 = vld [vmem:[%s2894_s1 + $0x50] sm:$0xff] }
   0x5   :  { %2290 = vmatprep.subr.mxu1 %v26_v3  ;;  %2280 = vmatpush3.msra.mxu0 %v22_v2  ;;  %v2597_v8 = vld [vmem:[%s2893_s0] sm:$0xff]  ;;  %v34_v13 = vld [vmem:[%s2894_s1 + $0x70] sm:$0xff]  ;;  %v29_v14 = vld [vmem:[%s2894_s1 + $0x48] sm:$0xff] }
   0x6   :  { %2291 = vmatpush3.msra.mxu1 %v26_v3  ;;  %2281 = vmatprep.subr.mxu0 %v21_v4  ;;  %v33_v15 = vld [vmem:[%s2894_s1 + $0x68] sm:$0xff]  ;;  %v28_v16 = vld [vmem:[%s2894_s1 + $0x40] sm:$0xff] }
   0x7   :  { %2292 = vmatprep.subr.mxu1 %v25_v5  ;;  %2282 = vmatpush3.msra.mxu0 %v21_v4  ;;  %v32_v17 = vld [vmem:[%s2894_s1 + $0x60] sm:$0xff] }
   0x8   :  { %2293 = vmatpush3.msra.mxu1 %v25_v5  ;;  %2283 = vmatprep.subr.mxu0 %v20_v6 }
   0x9   :  { %2294 = vmatprep.subr.mxu1 %v24_v7  ;;  %2284 = vmatpush3.msra.mxu0 %v20_v6 }
   0xa   :  { %2285 = vmatprep.mubr.msk.f32.mxu0 %vm80_vm0, %v2597_v8  ;;  %2295 = vmatpush3.msra.mxu1 %v24_v7 }
   0xb   :  { %2286 = vmatmul.mubr.msk.f32.vlgmr.msra.gmra.mxu0 %vm80_vm0, %v2602_v9  ;;  %2296 = vmatprep.mubr.msk.f32.mxu1 %vm80_vm0, %v2597_v8 }
   0xc   :  { %2299 = vmatprep.subr.mxu0 %v31_v10  ;;  %2310 = vmatprep.subr.mxu1 %v35_v11 }
   0xd   :  { %2297 = vmatmul.mubr.msk.f32.vlgmr.msra.gmra.mxu1 %vm80_vm0, %v2602_v9  ;;  %2300 = vmatpush3.msra.mxu0 %v31_v10 }
   0xe   :  { %2311 = vmatpush3.msra.mxu1 %v35_v11  ;;  %2301 = vmatprep.subr.mxu0 %v30_v12 }
   0xf   :  { %2312 = vmatprep.subr.mxu1 %v34_v13  ;;  %2302 = vmatpush3.msra.mxu0 %v30_v12 }
  0x10   :  { %2313 = vmatpush3.msra.mxu1 %v34_v13  ;;  %2303 = vmatprep.subr.mxu0 %v29_v14 }
  0x11   :  { %2314 = vmatprep.subr.mxu1 %v33_v15 }
  0x12   :  { %9 = vsyncpa [#allocation3], 0  ;;  %2304 = vmatpush3.msra.mxu0 %v29_v14  ;;  %2315 = vmatpush3.msra.mxu1 %v33_v15  ;;  %v39_v18 = vld [vmem:[%s2894_s1 + $0x98] sm:$0xff]  ;;  %v38_v20 = vld [vmem:[%s2894_s1 + $0x90] sm:$0xff]  ;;  %vm987_vm1 = vcmask 64512   ;;  %vm1336_vm2 = vcmask 130048  }
  0x13   :  { %2305 = vmatprep.subr.mxu0 %v28_v16  ;;  %2316 = vmatprep.subr.mxu1 %v32_v17  ;;  %v43_v19 = vld [vmem:[%s2894_s1 + $0xb8] sm:$0xff]  ;;  %v42_v21 = vld [vmem:[%s2894_s1 + $0xb0] sm:$0xff]  ;;  %v37_v22 = vld [vmem:[%s2894_s1 + $0x88] sm:$0xff] }
  0x14   :  { %2306 = vmatpush3.msra.mxu0 %v28_v16  ;;  %2307 = vmatprep.mubr.msk.f32.mxu0 %vm80_vm0, %v2597_v8  ;;  %v41_v23 = vld [vmem:[%s2894_s1 + $0xa8] sm:$0xff]  ;;  %v36_v24 = vld [vmem:[%s2894_s1 + $0x80] sm:$0xff]  ;;  %v47_v26 = vld [vmem:[%s2894_s1 + $0xd8] sm:$0xff] }
  0x15   :  { %2317 = vmatpush3.msra.mxu1 %v32_v17  ;;  %2308 = vmatmul.mubr.msk.f32.vlgmr.msra.gmra.mxu0 %vm80_vm0, %v2602_v9  ;;  %v40_v25 = vld [vmem:[%s2894_s1 + $0xa0] sm:$0xff]  ;;  %v51_v27 = vld [vmem:[%s2894_s1 + $0xf8] sm:$0xff]  ;;  %v46_v28 = vld [vmem:[%s2894_s1 + $0xd0] sm:$0xff] }
  0x16   :  { %2318 = vmatprep.mubr.msk.f32.mxu1 %vm80_vm0, %v2597_v8  ;;  %2321 = vmatprep.subr.mxu0 %v39_v18  ;;  %v50_v29 = vld [vmem:[%s2894_s1 + $0xf0] sm:$0xff]  ;;  %v45_v30 = vld [vmem:[%s2894_s1 + $0xc8] sm:$0xff]  ;;  %v44_v32 = vld [vmem:[%s2894_s1 + $0xc0] sm:$0xff] }
  0x17   :  { %2332 = vmatprep.subr.mxu1 %v43_v19  ;;  %2319 = vmatmul.mubr.msk.f32.vlgmr.msra.gmra.mxu1 %vm80_vm0, %v2602_v9  ;;  %v49_v31 = vld [vmem:[%s2894_s1 + $0xe8] sm:$0xff]  ;;  %v48_v33 = vld [vmem:[%s2894_s1 + $0xe0] sm:$0xff]  ;;  %v55_v34 = vld [vmem:[%s2894_s1 + $0x118] sm:$0xff] }
  0x18   :  { %2322 = vmatpush3.msra.mxu0 %v39_v18  ;;  %2333 = vmatpush3.msra.mxu1 %v43_v19  ;;  %v59_v35 = vld [vmem:[%s2894_s1 + $0x138] sm:$0xff]  ;;  %v54_v36 = vld [vmem:[%s2894_s1 + $0x110] sm:$0xff]  ;;  %v53_v38 = vld [vmem:[%s2894_s1 + $0x108] sm:$0xff] }
  0x19   :  { %2323 = vmatprep.subr.mxu0 %v38_v20  ;;  %2334 = vmatprep.subr.mxu1 %v42_v21  ;;  %v58_v37 = vld [vmem:[%s2894_s1 + $0x130] sm:$0xff]  ;;  %v57_v39 = vld [vmem:[%s2894_s1 + $0x128] sm:$0xff]  ;;  %v52_v40 = vld [vmem:[%s2894_s1 + $0x100] sm:$0xff] }
  0x1a   :  { %2324 = vmatpush3.msra.mxu0 %v38_v20  ;;  %2335 = vmatpush3.msra.mxu1 %v42_v21  ;;  %v56_v41 = vld [vmem:[%s2894_s1 + $0x120] sm:$0xff]  ;;  %v63_v42 = vld [vmem:[%s2894_s1 + $0x158] sm:$0xff]  ;;  %v62_v43 = vld [vmem:[%s2894_s1 + $0x150] sm:$0xff] }
  0x1b   :  { %2325 = vmatprep.subr.mxu0 %v37_v22  ;;  %2336 = vmatprep.subr.mxu1 %v41_v23  ;;  %v67_v44 = vld [vmem:[%s2894_s1 + $0x178] sm:$0xff]  ;;  %v61_v45 = vld [vmem:[%s2894_s1 + $0x148] sm:$0xff]  ;;  %v66_v46 = vld [vmem:[%s2894_s1 + $0x170] sm:$0xff] }
  0x1c   :  { %2326 = vmatpush3.msra.mxu0 %v37_v22  ;;  %2337 = vmatpush3.msra.mxu1 %v41_v23  ;;  %v60_v47 = vld [vmem:[%s2894_s1 + $0x140] sm:$0xff]  ;;  %v65_v48 = vld [vmem:[%s2894_s1 + $0x168] sm:$0xff]  ;;  %v75_v11 = vld [vmem:[%s2896_s3 + $0x18] sm:$0xff] }
  0x1d   :  { %2327 = vmatprep.subr.mxu0 %v36_v24  ;;  %2338 = vmatprep.subr.mxu1 %v40_v25  ;;  %v64_v49 = vld [vmem:[%s2894_s1 + $0x160] sm:$0xff]  ;;  %v73_v10 = vld [vmem:[%s2896_s3 + $0x8] sm:$0xff]  ;;  %v74_v15 = vld [vmem:[%s2896_s3 + $0x10] sm:$0xff] }
  0x1e   :  { %2328 = vmatpush3.msra.mxu0 %v36_v24  ;;  %2329 = vmatprep.mubr.msk.f32.mxu0 %vm80_vm0, %v2597_v8  ;;  %v72_v14 = vld [vmem:[%s2896_s3] sm:$0xff] }
  0x1f   :  { %2339 = vmatpush3.msra.mxu1 %v40_v25  ;;  %2340 = vmatprep.mubr.msk.f32.mxu1 %vm80_vm0, %v2597_v8 }
  0x20   :  { %2330 = vmatmul.mubr.msk.f32.vlgmr.msra.gmra.mxu0 %vm80_vm0, %v2602_v9  ;;  %2341 = vmatmul.mubr.msk.f32.vlgmr.msra.gmra.mxu1 %vm80_vm0, %v2602_v9 }
  0x21   :  { %2343 = vmatprep.subr.mxu0 %v47_v26  ;;  %2354 = vmatprep.subr.mxu1 %v51_v27 }
  0x22   :  { %2344 = vmatpush3.msra.mxu0 %v47_v26  ;;  %2355 = vmatpush3.msra.mxu1 %v51_v27  ;;  %v77_v26 = vld [vmem:[%s2896_s3 + $0x28] sm:$0xff]  ;;  %v79_v27 = vld [vmem:[%s2896_s3 + $0x38] sm:$0xff] }
  0x23   :  { %2345 = vmatprep.subr.mxu0 %v46_v28  ;;  %2356 = vmatprep.subr.mxu1 %v50_v29 }
  0x24   :  { %2346 = vmatpush3.msra.mxu0 %v46_v28  ;;  %2357 = vmatpush3.msra.mxu1 %v50_v29 }
  0x25   :  { %2347 = vmatprep.subr.mxu0 %v45_v30  ;;  %2358 = vmatprep.subr.mxu1 %v49_v31 }
  0x26   :  { %2348 = vmatpush3.msra.mxu0 %v45_v30  ;;  %2359 = vmatpush3.msra.mxu1 %v49_v31  ;;  %v76_v30 = vld [vmem:[%s2896_s3 + $0x20] sm:$0xff] }
  0x27   :  { %2349 = vmatprep.subr.mxu0 %v44_v32  ;;  %2360 = vmatprep.subr.mxu1 %v48_v33 }
  0x28   :  { %2350 = vmatpush3.msra.mxu0 %v44_v32  ;;  %2351 = vmatprep.mubr.msk.f32.mxu0 %vm80_vm0, %v2597_v8 }
  0x29   :  { %2361 = vmatpush3.msra.mxu1 %v48_v33  ;;  %2362 = vmatprep.mubr.msk.f32.mxu1 %vm80_vm0, %v2597_v8 }
  0x2a   :  { %2352 = vmatmul.mubr.msk.f32.vlgmr.msra.gmra.mxu0 %vm80_vm0, %v2602_v9  ;;  %2363 = vmatmul.mubr.msk.f32.vlgmr.msra.gmra.mxu1 %vm80_vm0, %v2602_v9 }
  0x2b   :  { %2365 = vmatprep.subr.mxu0 %v55_v34  ;;  %2376 = vmatprep.subr.mxu1 %v59_v35 }
  0x2c   :  { %2366 = vmatpush3.msra.mxu0 %v55_v34  ;;  %2377 = vmatpush3.msra.mxu1 %v59_v35  ;;  %v78_v34 = vld [vmem:[%s2896_s3 + $0x30] sm:$0xff] }
  0x2d   :  { %2367 = vmatprep.subr.mxu0 %v54_v36  ;;  %2378 = vmatprep.subr.mxu1 %v58_v37 }
  0x2e   :  { %2368 = vmatpush3.msra.mxu0 %v54_v36  ;;  %2379 = vmatpush3.msra.mxu1 %v58_v37 }
  0x2f   :  { %2369 = vmatprep.subr.mxu0 %v53_v38  ;;  %2380 = vmatprep.subr.mxu1 %v57_v39 }
  0x30   :  { %2370 = vmatpush3.msra.mxu0 %v53_v38  ;;  %2373 = vmatprep.mubr.msk.f32.mxu0 %vm80_vm0, %v2597_v8 }
  0x31   :  { %2371 = vmatprep.subr.mxu0 %v52_v40  ;;  %2381 = vmatpush3.msra.mxu1 %v57_v39 }
  0x32   :  { %2372 = vmatpush3.msra.mxu0 %v52_v40  ;;  %2382 = vmatprep.subr.mxu1 %v56_v41 }
  0x33   :  { %2387 = vmatprep.subr.mxu0 %v63_v42  ;;  %2374 = vmatmul.mubr.msk.f32.vlgmr.msra.gmra.mxu0 %vm80_vm0, %v2602_v9 }
  0x34   :  { %2388 = vmatpush3.msra.mxu0 %v63_v42  ;;  %2383 = vmatpush3.msra.mxu1 %v56_v41 }
  0x35   :  { %2389 = vmatprep.subr.mxu0 %v62_v43  ;;  %2384 = vmatprep.mubr.msk.f32.mxu1 %vm80_vm0, %v2597_v8 }
  0x36   :  { %2390 = vmatpush3.msra.mxu0 %v62_v43  ;;  %2398 = vmatprep.subr.mxu1 %v67_v44 }
  0x37   :  { %2385 = vmatmul.mubr.msk.f32.vlgmr.msra.gmra.mxu1 %vm80_vm0, %v2602_v9  ;;  %2391 = vmatprep.subr.mxu0 %v61_v45 }
  0x38   :  { %2399 = vmatpush3.msra.mxu1 %v67_v44  ;;  %2392 = vmatpush3.msra.mxu0 %v61_v45 }
  0x39   :  { %2400 = vmatprep.subr.mxu1 %v66_v46  ;;  %2395 = vmatprep.mubr.msk.f32.mxu0 %vm80_vm0, %v2597_v8 }
  0x3a   :  { %2401 = vmatpush3.msra.mxu1 %v66_v46  ;;  %2406 = vmatprep.mubr.msk.f32.mxu1 %vm80_vm0, %v2597_v8 }
  0x3b   :  { %2393 = vmatprep.subr.mxu0 %v60_v47  ;;  %2402 = vmatprep.subr.mxu1 %v65_v48 }
  0x3c   :  { %2394 = vmatpush3.msra.mxu0 %v60_v47  ;;  %2403 = vmatpush3.msra.mxu1 %v65_v48 }
  0x3d   :  { %2396 = vmatmul.mubr.msk.f32.vlgmr.msra.gmra.mxu0 %vm80_vm0, %v2602_v9  ;;  %2404 = vmatprep.subr.mxu1 %v64_v49 }
  0x3e   :  { %2405 = vmatpush3.msra.mxu1 %v64_v49 }
  0x3f   :  { %2407 = vmatmul.mubr.msk.f32.vlgmr.msra.gmra.mxu1 %vm80_vm0, %v2602_v9 }
  0xcb   :  { %v2287_v50 = vpop.f32.mrf.mxu0 }
  0xcd   :  { %v153_v51 = vpop.f32.mrf.mxu0  ;;  %v2298_v52 = vpop.f32.mrf.mxu1 }
  0xce   :  { %2413 = vmatprep.mubr.msk.f32.mxu0 %vm987_vm1, %v153_v51 }
  0xcf   :  { %v228_v53 = vpop.f32.mrf.mxu1 }
  0xd0   :  { %2420 = vmatprep.mubr.msk.f32.mxu1 %vm987_vm1, %v228_v53 }
  0xd5   :  { %v2309_v55 = vpop.f32.mrf.mxu0 }
  0xd7   :  { %v2320_v54 = vpop.f32.mrf.mxu1  ;;  %v303_v57 = vpop.f32.mrf.mxu0 }
  0xd9   :  { %v378_v56 = vpop.f32.mrf.mxu1 }
  0xe0   :  { %v2331_v58 = vpop.f32.mrf.mxu0  ;;  %v2342_v59 = vpop.f32.mrf.mxu1 }
  0xe1   :  { %2409 = vmatprep.subr.msk.mxu0 %vm987_vm1, %v2331_v58  ;;  %2416 = vmatprep.subr.msk.mxu1 %vm987_vm1, %v2342_v59 }
  0xe2   :  { %v453_v60 = vpop.f32.mrf.mxu0  ;;  %2410 = vmatpush3.xpose.msk.msra.mxu0 %vm987_vm1, %v2331_v58  ;;  %2417 = vmatpush3.xpose.msk.msra.mxu1 %vm987_vm1, %v2342_v59  ;;  %v528_v61 = vpop.f32.mrf.mxu1 }
  0xe3   :  { %2411 = vmatprep.subr.msk.mxu0 %vm987_vm1, %v453_v60  ;;  %2418 = vmatprep.subr.msk.mxu1 %vm987_vm1, %v528_v61 }
  0xe6   :  { %2412 = vmatpush3.xpose.msk.msra.mxu0 %vm987_vm1, %v453_v60  ;;  %2419 = vmatpush3.xpose.msk.msra.mxu1 %vm987_vm1, %v528_v61 }
  0xe9   :  { %2414 = vmatmul.mubr.msk.f32.vlgmr.msra.gmra.mxu0 %vm987_vm1, %v2287_v50  ;;  %2421 = vmatmul.mubr.msk.f32.vlgmr.msra.gmra.mxu1 %vm987_vm1, %v2298_v52 }
  0xea   :  { %v2353_v62 = vpop.f32.mrf.mxu0  ;;  %v2364_v63 = vpop.f32.mrf.mxu1  ;;  %2427 = vmatprep.mubr.msk.f32.mxu0 %vm987_vm1, %v303_v57  ;;  %2434 = vmatprep.mubr.msk.f32.mxu1 %vm987_vm1, %v378_v56 }
  0xeb   :  { %2423 = vmatprep.subr.msk.mxu0 %vm987_vm1, %v2353_v62  ;;  %2430 = vmatprep.subr.msk.mxu1 %vm987_vm1, %v2364_v63 }
  0xec   :  { %v603_v0 = vpop.f32.mrf.mxu0  ;;  %2424 = vmatpush3.xpose.msk.msra.mxu0 %vm987_vm1, %v2353_v62  ;;  %2431 = vmatpush3.xpose.msk.msra.mxu1 %vm987_vm1, %v2364_v63  ;;  %v678_v1 = vpop.f32.mrf.mxu1 }
  0xed   :  { %2425 = vmatprep.subr.msk.mxu0 %vm987_vm1, %v603_v0  ;;  %2432 = vmatprep.subr.msk.mxu1 %vm987_vm1, %v678_v1 }
  0xf0   :  { %2426 = vmatpush3.xpose.msk.msra.mxu0 %vm987_vm1, %v603_v0  ;;  %2433 = vmatpush3.xpose.msk.msra.mxu1 %vm987_vm1, %v678_v1 }
  0xf3   :  { %2428 = vmatmul.mubr.msk.f32.vlgmr.msra.gmra.mxu0 %vm987_vm1, %v2309_v55  ;;  %2435 = vmatmul.mubr.msk.f32.vlgmr.msra.gmra.mxu1 %vm987_vm1, %v2320_v54  ;;  %v2375_v2 = vpop.f32.mrf.mxu0 }
  0xf4   :  { %2437 = vmatprep.subr.mxu0 %v2375_v2 }
  0xf5   :  { %v753_v3 = vpop.f32.mrf.mxu0  ;;  %2438 = vmatpush3.msra.mxu0 %v2375_v2 }
  0xf6   :  { %2439 = vmatprep.subr.mxu0 %v753_v3 }
  0xf7   :  { %v2386_v4 = vpop.f32.mrf.mxu1  ;;  %2440 = vmatpush3.msra.mxu0 %v753_v3 }
  0xf8   :  { %2444 = vmatprep.subr.mxu1 %v2386_v4 }
  0xf9   :  { %v828_v5 = vpop.f32.mrf.mxu1  ;;  %2445 = vmatpush3.msra.mxu1 %v2386_v4 }
  0xfa   :  { %2446 = vmatprep.subr.mxu1 %v828_v5 }
  0xfb   :  { %2447 = vmatpush3.msra.mxu1 %v828_v5 }
  0xfd   :  { %v2796_v6 = vpop.f32.mrf.mxu0 }
  0xfe   :  { %2451 = vmatprep.subr.mxu0 %v2796_v6 }
  0xff   :  { %v2799_v7 = vpop.f32.mrf.mxu1  ;;  %v2804_v9 = vpop.f32.mrf.mxu0 }
 0x100   :  { %2458 = vmatprep.subr.mxu1 %v2799_v7 }
 0x101   :  { %v2802_v8 = vpop.f32.mrf.mxu1 }
 0x1a9   :  { %v2415_v12 = vpop.f32.mrf.mxu0  ;;  %v2422_v13 = vpop.f32.mrf.mxu1 }
 0x1aa   :  { %v1072_v16 = vadd.f32 %v2415_v12, %v73_v10  ;;  %v1159_v17 = vadd.f32 %v2422_v13, %v75_v11 }
 0x1ab   :  { %v1066_v18 = vpop.f32.mrf.mxu0  ;;  %v1153_v19 = vpop.f32.mrf.mxu1 }
 0x1ac   :  { %v1067_v20 = vadd.f32 %v1066_v18, %v72_v14  ;;  %v1154_v21 = vadd.f32 %v1153_v19, %v74_v15  ;;  %v1346_v22 = vsel %vm1336_vm2, %v1159_v17, -inf  ;;  %v1340_v23 = vsel %vm1336_vm2, %v1072_v16, -inf }
 0x1ad   :  { %1347 = vmax.xlane.f32.xlu1 %v1346_v22  ;;  %1341 = vmax.xlane.f32.xlu0 %v1340_v23 }
 0x1ae   :  { %v1343_v24 = vsel %vm1336_vm2, %v1154_v21, -inf  ;;  %v1337_v25 = vsel %vm1336_vm2, %v1067_v20, -inf }
 0x1b1   :  { %1344 = vmax.xlane.f32.xlu1 %v1343_v24  ;;  %1338 = vmax.xlane.f32.xlu0 %v1337_v25 }
 0x1b3   :  { %v2436_v28 = vpop.f32.mrf.mxu1  ;;  %v2429_v29 = vpop.f32.mrf.mxu0 }
 0x1b4   :  { %v1246_v31 = vadd.f32 %v2429_v29, %v77_v26  ;;  %v1333_v35 = vadd.f32 %v2436_v28, %v79_v27 }
 0x1b5   :  { %v1240_v32 = vpop.f32.mrf.mxu0  ;;  %v1327_v33 = vpop.f32.mrf.mxu1 }
 0x1b6   :  { %v1241_v36 = vadd.f32 %v1240_v32, %v76_v30  ;;  %v1352_v37 = vsel %vm1336_vm2, %v1246_v31, -inf  ;;  %v1328_v38 = vadd.f32 %v1327_v33, %v78_v34  ;;  %v1358_v40 = vsel %vm1336_vm2, %v1333_v35, -inf }
 0x1b7   :  { %1353 = vmax.xlane.f32.xlu1 %v1352_v37 }
 0x1b8   :  { %v1349_v39 = vsel %vm1336_vm2, %v1241_v36, -inf  ;;  %v1355_v41 = vsel %vm1336_vm2, %v1328_v38, -inf }
 0x1b9   :  { %1350 = vmax.xlane.f32.xlu0 %v1349_v39 }
 0x1bb   :  { %1359 = vmax.xlane.f32.xlu1 %v1358_v40 }
 0x1bd   :  { %1356 = vmax.xlane.f32.xlu0 %v1355_v41 }
 0x236   :  { %v1348_v42 = vpop.xlane.xlu1 %1347  ;;  %v1342_v43 = vpop.xlane.xlu0 %1341 }
 0x237   :  { %v1364_v44 = vsub.f32 %v1159_v17, %v1348_v42  ;;  %v1362_v45 = vsub.f32 %v1072_v16, %v1342_v43 }
 0x239   :  { %v1371_v46 = vmul.f32 1.442695, %v1362_v45  ;;  %v1375_v47 = vmul.f32 1.442695, %v1364_v44  ;;  %v71_v45 = vld [vmem:[%s2895_s2 + $0x18] sm:$0xff] }
 0x23a   :  { %v1345_v48 = vpop.xlane.xlu1 %1344  ;;  %v1339_v49 = vpop.xlane.xlu0 %1338 }
 0x23b   :  { %v1363_v50 = vsub.f32 %v1154_v21, %v1345_v48  ;;  %v1361_v51 = vsub.f32 %v1067_v20, %v1339_v49  ;;  %2488 = vpow2.f32 %v1371_v46 }
 0x23c   :  { %2490 = vpow2.f32 %v1375_v47 }
 0x23d   :  { %v1369_v52 = vmul.f32 1.442695, %v1361_v51  ;;  %v1373_v53 = vmul.f32 1.442695, %v1363_v50 }
 0x23f   :  { %2492 = vpow2.f32 %v1369_v52 }
 0x240   :  { %v1354_v54 = vpop.xlane.xlu1 %1353  ;;  %2494 = vpow2.f32 %v1373_v53 }
 0x241   :  { %v1366_v55 = vsub.f32 %v1246_v31, %v1354_v54 }
 0x242   :  { %v1351_v56 = vpop.xlane.xlu0 %1350 }
 0x243   :  { %v1379_v57 = vmul.f32 1.442695, %v1366_v55  ;;  %v1365_v58 = vsub.f32 %v1241_v36, %v1351_v56 }
 0x244   :  { %v1360_v59 = vpop.xlane.xlu1 %1359 }
 0x245   :  { %2496 = vpow2.f32 %v1379_v57  ;;  %v1377_v60 = vmul.f32 1.442695, %v1365_v58  ;;  %v1368_v61 = vsub.f32 %v1333_v35, %v1360_v59 }
 0x246   :  { %v1357_v62 = vpop.xlane.xlu0 %1356 }
 0x247   :  { %2498 = vpow2.f32 %v1377_v60  ;;  %v1383_v63 = vmul.f32 1.442695, %v1368_v61  ;;  %v1367_v0 = vsub.f32 %v1328_v38, %v1357_v62 }
 0x248   :  { %v2489_v1 = vpop.eup %2488 }
 0x249   :  { %2500 = vpow2.f32 %v1383_v63  ;;  %v1381_v2 = vmul.f32 1.442695, %v1367_v0  ;;  %v1388_v3 = vsel %vm1336_vm2, %v2489_v1, 0.0  ;;  %v2491_v4 = vpop.eup %2490 }
 0x24a   :  { %1389 = vadd.xlane.f32.xlu1 %v1388_v3  ;;  %v1394_v10 = vsel %vm1336_vm2, %v2491_v4, 0.0 }
 0x24b   :  { %2502 = vpow2.f32 %v1381_v2 }
 0x24c   :  { %v2493_v5 = vpop.eup %2492 }
 0x24d   :  { %v1385_v11 = vsel %vm1336_vm2, %v2493_v5, 0.0  ;;  %v2495_v12 = vpop.eup %2494 }
 0x24e   :  { %1395 = vadd.xlane.f32.xlu1 %v1394_v10  ;;  %1386 = vadd.xlane.f32.xlu0 %v1385_v11  ;;  %v1391_v14 = vsel %vm1336_vm2, %v2495_v12, 0.0 }
 0x252   :  { %v2497_v13 = vpop.eup %2496  ;;  %1392 = vadd.xlane.f32.xlu0 %v1391_v14 }
 0x253   :  { %v1400_v15 = vsel %vm1336_vm2, %v2497_v13, 0.0 }
 0x254   :  { %v2499_v16 = vpop.eup %2498  ;;  %1401 = vadd.xlane.f32.xlu1 %v1400_v15 }
 0x255   :  { %v1397_v18 = vsel %vm1336_vm2, %v2499_v16, 0.0 }
 0x256   :  { %v2501_v17 = vpop.eup %2500  ;;  %1398 = vadd.xlane.f32.xlu0 %v1397_v18 }
 0x257   :  { %v1406_v19 = vsel %vm1336_vm2, %v2501_v17, 0.0 }
 0x258   :  { %v2503_v20 = vpop.eup %2502  ;;  %1407 = vadd.xlane.f32.xlu1 %v1406_v19 }
 0x259   :  { %v1403_v21 = vsel %vm1336_vm2, %v2503_v20, 0.0 }
 0x25a   :  { %1404 = vadd.xlane.f32.xlu0 %v1403_v21 }
 0x2d3   :  { %v1390_v22 = vpop.xlane.xlu1 %1389 }
 0x2d4   :  { %2504 = vrcp.f32 %v1390_v22 }
 0x2d7   :  { %v1396_v23 = vpop.xlane.xlu1 %1395  ;;  %v1387_v24 = vpop.xlane.xlu0 %1386 }
 0x2d8   :  { %2506 = vrcp.f32 %v1387_v24 }
 0x2d9   :  { %2508 = vrcp.f32 %v1396_v23 }
 0x2db   :  { %v1393_v25 = vpop.xlane.xlu0 %1392 }
 0x2dc   :  { %2510 = vrcp.f32 %v1393_v25 }
 0x2dd   :  { %v1402_v26 = vpop.xlane.xlu1 %1401 }
 0x2de   :  { %2512 = vrcp.f32 %v1402_v26 }
 0x2df   :  { %v1399_v27 = vpop.xlane.xlu0 %1398 }
 0x2e0   :  { %2514 = vrcp.f32 %v1399_v27 }
 0x2e1   :  { %v1408_v28 = vpop.xlane.xlu1 %1407  ;;  %v2505_v30 = vpop.eup %2504 }
 0x2e2   :  { %2516 = vrcp.f32 %v1408_v28  ;;  %v1418_v34 = vmul.f32 %v2505_v30, %v2489_v1 }
 0x2e3   :  { %v1405_v29 = vpop.xlane.xlu0 %1404 }
 0x2e4   :  { %2518 = vrcp.f32 %v1405_v29 }
 0x2e5   :  { %v2507_v31 = vpop.eup %2506 }
 0x2e6   :  { %v1417_v32 = vmul.f32 %v2507_v31, %v2493_v5  ;;  %v2509_v33 = vpop.eup %2508 }
 0x2e7   :  { %v1420_v37 = vmul.f32 %v2509_v33, %v2491_v4 }
 0x2e8   :  { %2441 = vmatprep.mubr.msk.f32.mxu0 %vm1336_vm2, %v1417_v32 }
 0x2e9   :  { %v2511_v35 = vpop.eup %2510  ;;  %2442 = vmatmul.mubr.msk.f32.vlgmr.msra.gmra.mxu0 %vm1336_vm2, %v1418_v34 }
 0x2ea   :  { %v1419_v36 = vmul.f32 %v2511_v35, %v2495_v12  ;;  %2452 = vmatpush3.msra.mxu0 %v2796_v6 }
 0x2eb   :  { %v2513_v38 = vpop.eup %2512  ;;  %2453 = vmatprep.subr.mxu0 %v2804_v9 }
 0x2ec   :  { %2448 = vmatprep.mubr.msk.f32.mxu1 %vm1336_vm2, %v1419_v36  ;;  %2454 = vmatpush3.msra.mxu0 %v2804_v9  ;;  %v1422_v41 = vmul.f32 %v2513_v38, %v2497_v13  ;;  %v70_v9 = vld [vmem:[%s2895_s2 + $0x10] sm:$0xff] }
 0x2ed   :  { %v2515_v39 = vpop.eup %2514  ;;  %2449 = vmatmul.mubr.msk.f32.vlgmr.msra.gmra.mxu1 %vm1336_vm2, %v1420_v37 }
 0x2ee   :  { %2459 = vmatpush3.msra.mxu1 %v2799_v7  ;;  %v1421_v40 = vmul.f32 %v2515_v39, %v2499_v16  ;;  %v68_v7 = vld [vmem:[%s2895_s2] sm:$0xff] }
 0x2ef   :  { %2460 = vmatprep.subr.mxu1 %v2802_v8  ;;  %v2517_v42 = vpop.eup %2516  ;;  %2465 = vmatprep.subr.mxu0 %v68_v7 }
 0x2f0   :  { %2461 = vmatpush3.msra.mxu1 %v2802_v8  ;;  %2455 = vmatprep.mubr.msk.f32.mxu0 %vm1336_vm2, %v1421_v40  ;;  %v1424_v44 = vmul.f32 %v2517_v42, %v2501_v17  ;;  %v69_v8 = vld [vmem:[%s2895_s2 + $0x8] sm:$0xff]  ;;  %s2542_s2 = smov [#allocation2]  }
 0x2f1   :  { %v2519_v6 = vpop.eup %2518  ;;  %2456 = vmatmul.mubr.msk.f32.vlgmr.msra.gmra.mxu0 %vm1336_vm2, %v1422_v41  ;;  %2470 = vmatprep.subr.mxu1 %v69_v8  ;;  %s2094_s29 = sshll.u32 %s2542_s2, 4  ;;  %s2095_s29 = int_to_ptr.vmem [resolvable:$true] %s2094_s29 }
 0x2f2   :  { %v1423_v43 = vmul.f32 %v2519_v6, %v2503_v20  ;;  %2466 = vmatpush3.msra.mxu0 %v68_v7  ;;  %s2520_s30 = scalar_lea.vmem %s2095_s29, 256  ;;  %p2525_p1 = scmp.lt.s32.totalorder %s2095_s29, %s2095_s29 }
 0x2f3   :  { %2475 = vmatprep.subr.mxu0 %v70_v9  ;;  %p2521_p0 = scmp.ne.s32.totalorder %s2095_s29, %s2520_s30  ;;  %p2526_p2 = scmp.lt.s32.totalorder %s2520_s30, %s2520_s30 }
 0x2f4   :  { %2462 = vmatprep.mubr.msk.f32.mxu1 %vm1336_vm2, %v1423_v43 }
 0x2f5   :  { %2463 = vmatmul.mubr.msk.f32.vlgmr.msra.gmra.mxu1 %vm1336_vm2, %v1424_v44  ;;  %p2527_p3 = por %p2526_p2, %p2525_p1 }
 0x2f6   :  { %2471 = vmatpush3.msra.mxu1 %v69_v8 }
 0x2f7   :  { %2480 = vmatprep.subr.mxu1 %v71_v45  ;;  %p2528_p4 = pnand %p2527_p3, %p2521_p0 }
 0x3a9   :  { %v2443_v46 = vpop.f32.mrf.mxu0 }
 0x3ab   :  { %v1497_v47 = vpop.f32.mrf.mxu0 }
 0x3ac   :  { %2467 = vmatprep.mubr.msk.f32.mxu0 %vm987_vm1, %v1497_v47 }
 0x3ad   :  { %v2450_v48 = vpop.f32.mrf.mxu1  ;;  %2468 = vmatmul.mubr.msk.f32.vlgmr.msra.gmra.mxu0 %vm987_vm1, %v2443_v46 }
 0x3ae   :  { %2476 = vmatpush3.msra.mxu0 %v70_v9 }
 0x3af   :  { %v1578_v49 = vpop.f32.mrf.mxu1 }
 0x3b0   :  { %2472 = vmatprep.mubr.msk.f32.mxu1 %vm987_vm1, %v1578_v49 }
 0x3b1   :  { %v2457_v50 = vpop.f32.mrf.mxu0  ;;  %2473 = vmatmul.mubr.msk.f32.vlgmr.msra.gmra.mxu1 %vm987_vm1, %v2450_v48 }
 0x3b2   :  { %2481 = vmatpush3.msra.mxu1 %v71_v45 }
 0x3b3   :  { %v1659_v51 = vpop.f32.mrf.mxu0 }
 0x3b4   :  { %2477 = vmatprep.mubr.msk.f32.mxu0 %vm987_vm1, %v1659_v51 }
 0x3b5   :  { %v2464_v52 = vpop.f32.mrf.mxu1  ;;  %2478 = vmatmul.mubr.msk.f32.vlgmr.msra.gmra.mxu0 %vm987_vm1, %v2457_v50 }
 0x3b7   :  { %v1740_v53 = vpop.f32.mrf.mxu1 }
 0x3b8   :  { %2482 = vmatprep.mubr.msk.f32.mxu1 %vm987_vm1, %v1740_v53 }
 0x3b9   :  { %2483 = vmatmul.mubr.msk.f32.vlgmr.msra.gmra.mxu1 %vm987_vm1, %v2464_v52 }
 0x46d   :  { %v2469_v54 = vpop.f32.mrf.mxu0 }
 0x46e   :  { %v2080_v60 = vsel %vm80_vm0, %v2469_v54, 0.0 }
 0x46f   :  { %v1821_v56 = vpop.f32.mrf.mxu0 }
 0x470   :  { %v2073_v1 = vsel %vm80_vm0, %v1821_v56, 0.0 }
 0x471   :  { %v2474_v55 = vpop.f32.mrf.mxu1 }
 0x472   :  { %v2081_v58 = vsel %vm80_vm0, %v2474_v55, 0.0 }
 0x473   :  { %v1902_v57 = vpop.f32.mrf.mxu1  ;;  %v2082_v63 = vadd.f32 %v2081_v58, %v2080_v60 }
 0x474   :  { %v2074_v61 = vsel %vm80_vm0, %v1902_v57, 0.0 }
 0x475   :  { %v2479_v59 = vpop.f32.mrf.mxu0  ;;  %v2075_v3 = vadd.f32 %v2074_v61, %v2073_v1 }
 0x476   :  { %v2083_v62 = vsel %vm80_vm0, %v2479_v59, 0.0 }
 0x477   :  { %v1983_v0 = vpop.f32.mrf.mxu0  ;;  %v2084_v4 = vadd.f32 %v2083_v62, %v2082_v63 }
 0x478   :  { %v2076_v2 = vsel %vm80_vm0, %v1983_v0, 0.0 }
 0x479   :  { %v2484_v5 = vpop.f32.mrf.mxu1  ;;  %v2077_v11 = vadd.f32 %v2076_v2, %v2075_v3 }
 0x47a   :  { %v2085_v10 = vsel %vm80_vm0, %v2484_v5, 0.0 }
 0x47b   :  { %v2086_v12 = vadd.f32 %v2085_v10, %v2084_v4  ;;  %v2064_v13 = vpop.f32.mrf.mxu1 }
 0x47c   :  { %v2078_v14 = vsel %vm80_vm0, %v2064_v13, 0.0 }
 0x47d   :  { %2088 = vst.msk [vmem:[#allocation2 + $0x8] sm:$0xff] %vm80_vm0, %v2086_v12  ;;  %v2079_v15 = vadd.f32 %v2078_v14, %v2077_v11 }
 0x47f   :  { %2087 = vst.msk [vmem:[#allocation2] sm:$0xff] %vm80_vm0, %v2079_v15 }
 0x480   :  { %2531 = shalt.err (!%p2528_p4)
}
 0x481   :  { %s2543_s5 = smov 128   ;;  %s2544_s6 = smov 8  }
 0x482   :  { %2100 = dma.vmem_to_hbm [thread:$0]  %s2095_s29, 256, %s2897_s4, [#allocation3], %s2543_s5, %s2543_s5, %s2544_s6  }
 0x483   :  { %2540 = dma.done.wait [#allocation3], 256  }
 0x484   :  { %2541 = vsyncadd [#allocation3], 4294967040 }
 0x485   :  { %2104 = vsyncpa [#allocation3], 1 }

</bundles_post_ra>
